<compile_context>
chip_gen: v5e
topology: v5e:2x2
jax: 0.10.0
libtpu: 0.0.40
codegen_flags: <defaults>
</compile_context>

<pallas_src>
import jax
import jax.numpy as jnp
from jax.experimental import pallas as pl
from jax.experimental.pallas import tpu as pltpu

_LANE = 128


def _fused_replicate_kernel(x_ref, o_ref):
    # x_ref: (tm, 128) input tile; o_ref: (3, tm, 128) replicated output tile.
    y1 = x_ref[...].astype(jnp.float32)
    t = jnp.tanh(y1)                           # one EUP transcendental / element
    y4 = jnp.maximum(t, 0.0) - t + y1          # == tanh(relu(y1)) + tanh(-y1) + y1
    y4sq = (y4 * y4).astype(o_ref.dtype)
    # Compute once, three lane-dense stores (the cat((x, x, x), dim=1) copies).
    o_ref[0, :, :] = y4sq
    o_ref[1, :, :] = y4sq
    o_ref[2, :, :] = y4sq


def _round_up(a, b):
    return ((a + b - 1) // b) * b


def model_forward(x, *, max_rows=4096):
    """x: (B, C, H, W). Returns (B, 3*C*H*W), same as the torch module."""
    B = x.shape[0]
    chw = 1
    for d in x.shape[1:]:
        chw *= d

    itemsize = jnp.dtype(x.dtype).itemsize
    sub = {4: 8, 2: 16, 1: 32}.get(itemsize, 8)   # dtype-aware sublane multiple

    x_flat = x.reshape(B, chw)

    # Pad only to a lane multiple when chw % 128 != 0.  f(0) == 0, so zero
    # padding is harmless; the padded tail is sliced off afterwards.
    # TODO(synk): replace wrapper pad/slice with an in-kernel masked tail store.
    chw_pad = _round_up(chw, _LANE)
    if chw_pad != chw:
        x_flat = jnp.pad(x_flat, ((0, 0), (0, chw_pad - chw)))
    m0 = chw_pad // _LANE
    x3 = x_flat.reshape(B, m0, _LANE)

    # Row-tile: multiple of the sublane packing (or the full extent when small).
    if m0 <= sub:
        tm = m0                                    # full-dim block (allowed)
    else:
        tm = min(max_rows, _round_up(m0, sub))
        # v7x megacore: guarantee >= 2 parallel blocks when B == 1.
        if B == 1 and pl.cdiv(m0, tm) < 2:
            tm = max(sub, _round_up(pl.cdiv(m0, 2), sub))
    num_m = pl.cdiv(m0, tm)

    out3 = pl.pallas_call(
        _fused_replicate_kernel,
        out_shape=jax.ShapeDtypeStruct((B, 3, m0, _LANE), x.dtype),
        grid=(B, num_m),
        in_specs=[pl.BlockSpec((None, tm, _LANE), lambda b, m: (b, m, 0))],
        out_specs=pl.BlockSpec((None, 3, tm, _LANE), lambda b, m: (b, 0, m, 0)),
        compiler_params=pltpu.CompilerParams(
            dimension_semantics=("parallel", "parallel"),
            vmem_limit_bytes=32 << 20,   # tm=4096 f32: ~16 MiB pipelined buffers
        ),
    )(x3)

    if chw_pad != chw:
        out = out3.reshape(B, 3, chw_pad)[:, :, :chw].reshape(B, 3 * chw)
    else:
        out = out3.reshape(B, 3 * chw)             # contiguous, free reshape
    return out


def _reference(x):
    B = x.shape[0]
    y1 = jnp.concatenate((x, x, x), axis=1).reshape(B, -1)
    y2 = jnp.tanh(jnp.maximum(y1, 0.0))
    y3 = jnp.tanh(-y1)
    y4 = y2 + y3 + y1
    return y4 * y4


if __name__ == "__main__":
    key = jax.random.PRNGKey(0)
    x = jax.random.normal(key, (2, 4, 16, 16), dtype=jnp.float32)

    out = jax.block_until_ready(model_forward(x))
    ref = _reference(x)

    assert out.shape == (2, 3 * 4 * 16 * 16), out.shape
    assert jnp.allclose(out, ref, atol=1e-5, rtol=1e-5), float(
        jnp.max(jnp.abs(out - ref))
    )
    print("KERNEL_OK")
</pallas_src>

<mosaic_0001>
module attributes {stable_mosaic.version = 11 : i64} {
  func.func @_fused_replicate_kernel(%arg0: i32, %arg1: i32, %arg2: memref<1x8x128xf32, #tpu.memory_space<vmem>>, %arg3: memref<1x3x8x128xf32, #tpu.memory_space<vmem>>) attributes {dimension_semantics = [#tpu.dimension_semantics<parallel>, #tpu.dimension_semantics<parallel>], iteration_bounds = array<i64: 2, 1>, scalar_prefetch = 0 : i64, scratch_operands = 0 : i64, tpu.core_type = #tpu.core_type<tc>, window_params = [{transform_indices = @transform_0, window_bounds = array<i64: 1, 8, 128>}, {transform_indices = @transform_1, window_bounds = array<i64: 1, 3, 8, 128>}]} {
    %c0 = arith.constant 0 : index
    %c0_0 = arith.constant 0 : index
    %c0_1 = arith.constant 0 : index
    %0 = vector.load %arg2[%c0, %c0_0, %c0_1] : memref<1x8x128xf32, #tpu.memory_space<vmem>>, vector<1x8x128xf32>
    %1 = vector.shape_cast %0 : vector<1x8x128xf32> to vector<8x128xf32>
    %2 = math.tanh %1 : vector<8x128xf32>
    %cst = arith.constant 0.000000e+00 : f32
    %3 = vector.broadcast %cst : f32 to vector<8x128xf32>
    %4 = arith.maximumf %2, %3 : vector<8x128xf32>
    %5 = arith.subf %4, %2 : vector<8x128xf32>
    %6 = arith.addf %5, %1 : vector<8x128xf32>
    %7 = arith.mulf %6, %6 : vector<8x128xf32>
    %c0_2 = arith.constant 0 : index
    %c0_3 = arith.constant 0 : index
    %c0_4 = arith.constant 0 : index
    %c0_5 = arith.constant 0 : index
    %8 = vector.load %arg3[%c0_2, %c0_3, %c0_4, %c0_5] : memref<1x3x8x128xf32, #tpu.memory_space<vmem>>, vector<1x1x8x128xf32>
    %9 = vector.shape_cast %8 : vector<1x1x8x128xf32> to vector<8x128xf32>
    %10 = vector.shape_cast %7 : vector<8x128xf32> to vector<1x1x8x128xf32>
    tpu.vector_store %arg3[%c0_2, %c0_3, %c0_4, %c0_5], %10 {strides = array<i32>} : memref<1x3x8x128xf32, #tpu.memory_space<vmem>>, vector<1x1x8x128xf32>,
    %c0_6 = arith.constant 0 : index
    %c1 = arith.constant 1 : index
    %c0_7 = arith.constant 0 : index
    %c0_8 = arith.constant 0 : index
    %11 = vector.load %arg3[%c0_6, %c1, %c0_7, %c0_8] : memref<1x3x8x128xf32, #tpu.memory_space<vmem>>, vector<1x1x8x128xf32>
    %12 = vector.shape_cast %11 : vector<1x1x8x128xf32> to vector<8x128xf32>
    %13 = vector.shape_cast %7 : vector<8x128xf32> to vector<1x1x8x128xf32>
    tpu.vector_store %arg3[%c0_6, %c1, %c0_7, %c0_8], %13 {strides = array<i32>} : memref<1x3x8x128xf32, #tpu.memory_space<vmem>>, vector<1x1x8x128xf32>,
    %c0_9 = arith.constant 0 : index
    %c2 = arith.constant 2 : index
    %c0_10 = arith.constant 0 : index
    %c0_11 = arith.constant 0 : index
    %14 = vector.load %arg3[%c0_9, %c2, %c0_10, %c0_11] : memref<1x3x8x128xf32, #tpu.memory_space<vmem>>, vector<1x1x8x128xf32>
    %15 = vector.shape_cast %14 : vector<1x1x8x128xf32> to vector<8x128xf32>
    %16 = vector.shape_cast %7 : vector<8x128xf32> to vector<1x1x8x128xf32>
    tpu.vector_store %arg3[%c0_9, %c2, %c0_10, %c0_11], %16 {strides = array<i32>} : memref<1x3x8x128xf32, #tpu.memory_space<vmem>>, vector<1x1x8x128xf32>,
    return
  }
  func.func @transform_0(%arg0: i32, %arg1: i32) -> (i32, i32, i32) {
    %c0_i32 = arith.constant 0 : i32
    %c0_i32_0 = arith.constant 0 : i32
    return %arg0, %arg1, %c0_i32 : i32, i32, i32
  }
  func.func @transform_1(%arg0: i32, %arg1: i32) -> (i32, i32, i32, i32) {
    %c0_i32 = arith.constant 0 : i32
    %c0_i32_0 = arith.constant 0 : i32
    %c0_i32_1 = arith.constant 0 : i32
    return %arg0, %c0_i32, %arg1, %c0_i32_0 : i32, i32, i32, i32
  }
}

</mosaic_0001>

<bundles_post_ra>
// kernel: tpu_custom_call.1
= control target key start
LH: loop header
LB: loop body
LE: loop exit
PB: predicated region body
PF: predicated region fallthrough
CT: control target
= control target key end

     0   :  { %6 = vsyncpa [#allocation3], 0  ;;  %s591_s0 = inlined_call_operand.hbm [shape: f32[2,8,128], index: 0, kind: input, shape index: {}]   ;;  %s592_s1 = inlined_call_operand.hbm [shape: f32[2,3,8,128], index: 1, kind: output, shape index: {}]  }
   0x1   :  { %8 = vsyncpa [#allocation3 + $0x1], 0 }
   0x2   :  { %9 = vsyncpa [#allocation4], 0 }
   0x3   :  { %11 = vsyncpa [#allocation4 + $0x1], 0  ;;  %s470_s6 = smov 0   ;;  %s472_s7 = smov 0  }
   0x4   :  { %s474_s8 = smov 0   ;;  %s476_s9 = smov 0  }
   0x5   :  { %s478_s10 = smov 0   ;;  %s480_s11 = smov 0  }
   0x6 LB: > { %s263_s12 = sadd.s32 4294967295, %s456_s11   ;;  %s264_s13 = sadd.s32 4294967294, %s456_s11   ;;  %s456_s11 = sphi %s480_s11, %s17_s11   ;;  %s452_s10 = sphi %s478_s10, %s601_s10   ;;  %s448_s9 = sphi %s476_s9, %s600_s9   ;;  %s444_s8 = sphi %s474_s8, %s599_s8   ;;  %s440_s7 = sphi %s472_s7, %s598_s7   ;;  %s436_s6 = sphi %s470_s6, %s597_s6  }
   0x7   : > { %s29_s14 = sadd.s32 1, %s452_s10  ;;  %s38_s15 = sadd.s32 1, %s444_s8 }
   0x8   : > { %p31_p0 = scmp.ge.s32.totalorder %s29_s14, 2  ;;  %p45_p1 = scmp.ne.s32.totalorder %s444_s8, %s440_s7 }
   0x9   : > { %p46_p2 = scmp.eq.s32.totalorder %s456_s11, 0  ;;  %p51_p3 = scmp.ne.s32.totalorder %s440_s7, %s436_s6 }
   0xa   : > { %s603_s14 = smov (%p31_p0, %s29_s14), 0  ;;  %p52_p5 = scmp.eq.s32.totalorder %s263_s12, 0 }
   0xb   : > { %p511_p4 = por %p46_p2, %p45_p1  ;;  %s33_s17 = ssub.s32 %s452_s10, %s603_s14 }
   0xc   : > { %p77_p6 = scmp.eq.s32.totalorder %s263_s12, 1  ;;  %p36_p7 = scmp.eq.s32.totalorder %s33_s17, 0 }
   0xd   : > { %p517_p8 = por %p52_p5, %p51_p3  ;;  %p83_p10 = scmp.eq.s32.totalorder %s264_s13, 1 }
   0xe   : > { %p521_p9 = por %p77_p6, %p45_p1  ;;  %p266_p12 = scmp.ge.s32.totalorder %s456_s11, 2 }
   0xf   : > { %s526_s20 = scalar_select %p36_p7, %s444_s8, %s38_s15  }
  0x10   : > { %p528_p11 = por %p83_p10, %p51_p3  ;;  %p290_p13 = scmp.lt.s32.totalorder %s456_s11, 2 }
  0x11   : > { %s103_s22 = sand.u32 1, %s444_s8   ;;  %s268_s24 = sshll.u32 %s452_s10, 3 }
  0x12   : > { %s267_s23 = sshll.u32 %s103_s22, 3  ;;  %s112_s27 = scalar_lea.hbm %s591_s0, %s268_s24 }
  0x13   : > { %s107_s28 = scalar_lea.vmem [#allocation2], %s267_s23  ;;  %s114_s30 = sshll.u32 %s112_s27, 4  ;;  %s115_s30 = int_to_ptr.hbm [resolvable:$true] %s114_s30 }
  0x14   : > { %s116_s29 = sshll.u32 %s107_s28, 4  ;;  %p283_p0 = pnand %p290_p13, %p511_p4  ;;  %s117_s29 = int_to_ptr.vmem [resolvable:$true] %s116_s29 }
  0x15   : > { %p269_p1 = scmp.ge.s32.totalorder %s456_s11, 1  ;;  %p121_p2 = scmp.lt.s32.totalorder %s456_s11, 3 }
  0x16   : > { %s104_s2 = scalar_lea.sflag [#allocation3], %s103_s22 }
  0x17   : > { %285 = dma.hbm_to_vmem [thread:$0]  (!%p283_p0), %s115_s30, 128, %s117_s29, %s104_s2  }
  0x18   : > { %p122_p3 = pnand %p269_p1, %p121_p2 }
  0x19   : > { %s544_s3 = sand.u32 (!%p122_p3), 1, %s440_s7  }
  0x1a   : > { %125 = sbr.rel (%p122_p3) target bundleno = 54 (0x36), region = 24  ;;  %s270_s4 = sshll.u32 (!%p122_p3), %s544_s3, 3 }
  0x1b   : > { %s128_s5 = scalar_lea.sflag (!%p122_p3), [#allocation3], %s544_s3  ;;  %s131_s12 = scalar_lea.vmem (!%p122_p3), [#allocation2], %s270_s4 }
  0x1f   : > { %427 = dma.done.wait (%p517_p8), %s128_s5, 128  }
  0x20   : > { %429 = vsyncadd (%p517_p8), %s128_s5, 4294967168  ;;  %v151_v0 = vld [vmem:[%s131_s12] sm:$0xff]  ;;  %s276_s13 = smul.u32 24, %s544_s3  ;;  %s163_s25 = scalar_lea.sflag [#allocation4], %s544_s3 }
  0x21   : > { %342 = vtanh.f32 %v151_v0  ;;  %s277_s15 = smul.u32 24, %s448_s9  ;;  %s394_s29 = scalar_lea.hbm %s592_s1, 48 }
  0x22   : > { %s150_s23 = scalar_lea.vmem [#allocation5], %s276_s13 }
  0x23   : > { %s175_s22 = scalar_lea.hbm %s592_s1, %s277_s15  ;;  %s176_s24 = sshll.u32 %s150_s23, 4  ;;  %s177_s24 = int_to_ptr.vmem [resolvable:$true] %s176_s24 }
  0x24   : > { %s178_s18 = sshll.u32 %s175_s22, 4  ;;  %s179_s18 = int_to_ptr.hbm [resolvable:$true] %s178_s18 }
  0x25   : > { %s388_s9 = sshra.s32 %s179_s18, 4  ;;  %s389_s9 = int_to_ptr.hbm [resolvable:$true] %s388_s9 }
  0x26   : > { %s390_s26 = scalar_lea.hbm %s389_s9, 24  ;;  %p395_p7 = scmp.lt.s32.totalorder %s389_s9, %s592_s1 }
  0x27   : > { %v343_v1 = vpop.eup %342  ;;  %p391_p4 = scmp.ne.s32.totalorder %s389_s9, %s390_s26  ;;  %p396_p8 = scmp.lt.s32.totalorder %s394_s29, %s390_s26 }
  0x28   : > { %v153_v2 = vmax.f32 %v343_v1, 0.0 }
  0x29   : > { %p392_p5 = pnand %p391_p4, %p521_p9  ;;  %p397_p10 = por %p396_p8, %p395_p7 }
  0x2a   : > { %v154_v3 = vsub.f32 %v153_v2, %v343_v1 }
  0x2b   : > { %p393_p6 = pneg %p392_p5 }
  0x2c   : > { %v155_v4 = vadd.f32 %v154_v3, %v151_v0 }
  0x2d   : > { %p398_p13 = pnand %p397_p10, %p393_p6 }
  0x2e   : > { %v156_v5 = vmul.f32 %v155_v4, %v155_v4 }
  0x30   : > { %157 = vst [vmem:[%s150_s23] sm:$0xff] %v156_v5 }
  0x31   : > { %271 = vst [vmem:[%s150_s23 + $0x8] sm:$0xff] %v156_v5 }
  0x32   : > { %272 = vst [vmem:[%s150_s23 + $0x10] sm:$0xff] %v156_v5 }
  0x33   : > { %401 = shalt.err (!%p398_p13)
}
  0x34   : > { %s458_s3 = smov 128   ;;  %s459_s4 = smov 8  }
  0x35   : > { %280 = dma.vmem_to_hbm [thread:$0]  (%p521_p9), %s177_s24, 384, %s179_s18, %s163_s25, %s458_s3, %s458_s3, %s459_s4  }
  0x36 PF: > { %s193_s5 = sand.u32 1, %s436_s6   ;;  %p287_p0 = pnand %p266_p12, %p528_p11 }
  0x37   : > { %s194_s12 = scalar_lea.sflag [#allocation4], %s193_s5 }
  0x38   : > { %p288_p1 = pneg %p287_p0 }
  0x3a   : > { %431 = dma.done.wait (%p288_p1), %s194_s12, 384  }
  0x3b   : > { %433 = vsyncadd (%p288_p1), %s194_s12, 4294966912  ;;  %s17_s11 = sadd.s32 1, %s456_s11   ;;  %s597_s6 = smov %s440_s7 }
  0x3c   : > { %p14_p2 = scmp.ge.s32.totalorder %s17_s11, 4   ;;  %s598_s7 = smov %s444_s8 }
  0x3d   : > { %s599_s8 = smov %s526_s20  ;;  %s600_s9 = smov %s452_s10 }
  0x3e   : > { %s601_s10 = smov %s603_s14  ;;  %16 = sbr.rel (!%p14_p2) target bundleno = 6 (0x6), region = 71 }
  0x43   :  { %200 = vsyncpa [#allocation3], 1 }
  0x44   :  { %202 = vsyncpa [#allocation3 + $0x1], 1 }
  0x45   :  { %203 = vsyncpa [#allocation4], 1 }
  0x46   :  { %205 = vsyncpa [#allocation4 + $0x1], 1 }

</bundles_post_ra>
